<compile_context>
chip_gen: v6e
topology: v6e:2x2x1
jax: 0.10.0
libtpu: 0.0.40
codegen_flags: <defaults>
</compile_context>

<pallas_src>
import functools
import math

import jax
import jax.numpy as jnp
from jax.experimental import pallas as pl
from jax.experimental.pallas import tpu as pltpu

_LANE = 128
_SUBLANE_BF16 = 16
# Budget for the double-buffered full-K weight block (bytes).
_WEIGHT_VMEM_BUDGET = 20 * 1024 * 1024
_VMEM_LIMIT_BYTES = 32 * 1024 * 1024


def _round_up(v: int, m: int) -> int:
    return ((v + m - 1) // m) * m


def _choose_tiles(k_pad: int, n_feat: int, w_itemsize: int):
    """Pick the N tile for a full-K weight block of shape (k_pad, tn)."""
    n128 = _round_up(max(int(n_feat), 1), _LANE)
    per_buf = _WEIGHT_VMEM_BUDGET // 2                 # two pipeline buffers
    tn_max = max(_LANE, (per_buf // (k_pad * w_itemsize)) // _LANE * _LANE)
    nt = -(-n128 // tn_max)                            # number of N tiles
    tn = _round_up(-(-n128 // nt), _LANE)              # balanced, lane-aligned
    return tn, nt, nt * tn                             # (tile, n_tiles, N_pad)


# ---------------------------------------------------------------------------
# Standalone linear: y = relu?(x @ W + b), grid over N tiles only (full K).
# ---------------------------------------------------------------------------
def _linear_kernel(x_ref, w_ref, b_ref, o_ref, *, apply_relu: bool):
    # x_ref: (Bp, Kp) bf16   w_ref: (Kp, tn) bf16   b_ref: (1, tn) f32
    y = jnp.dot(x_ref[...], w_ref[...], preferred_element_type=jnp.float32)
    y = y + b_ref[...]
    if apply_relu:
        y = jnp.maximum(y, 0.0)
    o_ref[...] = y.astype(o_ref.dtype)


def pallas_linear(x, w, b, *, tn: int, apply_relu: bool, out_dtype):
    Bp, Kp = x.shape
    Kw, Np = w.shape
    assert Kp == Kw, (Kp, Kw)
    nt = Np // tn
    kernel = functools.partial(_linear_kernel, apply_relu=apply_relu)
    return pl.pallas_call(
        kernel,
        out_shape=jax.ShapeDtypeStruct((Bp, Np), out_dtype),
        grid_spec=pltpu.PrefetchScalarGridSpec(
            num_scalar_prefetch=0,
            grid=(nt,),
            in_specs=[
                pl.BlockSpec((Bp, Kp), lambda n: (0, 0)),   # x: loaded once
                pl.BlockSpec((Kp, tn), lambda n: (0, n)),   # weights: streamed
                pl.BlockSpec((1, tn), lambda n: (0, n)),    # bias
            ],
            out_specs=pl.BlockSpec((Bp, tn), lambda n: (0, n)),
        ),
        compiler_params=pltpu.CompilerParams(
            dimension_semantics=("parallel",),
            vmem_limit_bytes=_VMEM_LIMIT_BYTES),
    )(x, w, b)


# ---------------------------------------------------------------------------
# Fused tail: out = (relu(x @ W1 + b1)) @ W2 + b2 in one pallas_call.
# The final output accumulates in VMEM across the W1 N-tiles.
# ---------------------------------------------------------------------------
def _fused_tail_kernel(x_ref, w1_ref, b1_ref, w2_ref, b2_ref, o_ref, acc_ref):
    n = pl.program_id(0)

    @pl.when(n == 0)
    def _():
        acc_ref[...] = jnp.zeros_like(acc_ref)

    h = jnp.dot(x_ref[...], w1_ref[...], preferred_element_type=jnp.float32)
    h = jnp.maximum(h + b1_ref[...], 0.0)               # hidden layer + ReLU
    acc_ref[...] += jnp.dot(h.astype(w2_ref.dtype), w2_ref[...],
                            preferred_element_type=jnp.float32)

    @pl.when(n == pl.num_programs(0) - 1)
    def _():
        o_ref[...] = (acc_ref[...] + b2_ref[...]).astype(o_ref.dtype)


def pallas_linear_fused_tail(x, w1, b1, w2, b2, *, tn1: int, out_dtype):
    Bp, Kp = x.shape
    Kw1, N1p = w1.shape
    Kw2, N2p = w2.shape
    assert Kp == Kw1 and N1p == Kw2, (Kp, Kw1, N1p, Kw2)
    nt = N1p // tn1
    return pl.pallas_call(
        _fused_tail_kernel,
        out_shape=jax.ShapeDtypeStruct((Bp, N2p), out_dtype),
        grid_spec=pltpu.PrefetchScalarGridSpec(
            num_scalar_prefetch=0,
            grid=(nt,),
            in_specs=[
                pl.BlockSpec((Bp, Kp), lambda n: (0, 0)),     # x: loaded once
                pl.BlockSpec((Kp, tn1), lambda n: (0, n)),    # W1 tile
                pl.BlockSpec((1, tn1), lambda n: (0, n)),     # b1 tile
                pl.BlockSpec((tn1, N2p), lambda n: (n, 0)),   # W2 K-slice
                pl.BlockSpec((1, N2p), lambda n: (0, 0)),     # b2
            ],
            out_specs=pl.BlockSpec((Bp, N2p), lambda n: (0, 0)),
            scratch_shapes=[pltpu.VMEM((Bp, N2p), jnp.float32)],
        ),
        compiler_params=pltpu.CompilerParams(
            dimension_semantics=("arbitrary",),   # reduction across N1 tiles
            vmem_limit_bytes=_VMEM_LIMIT_BYTES),
    )(x, w1, b1, w2, b2)


# ---------------------------------------------------------------------------
# Module wrapper
# ---------------------------------------------------------------------------
class FCHeadPallas:
    """JAX/Pallas equivalent of the PyTorch FCHead module (bf16 weights)."""

    def __init__(self, key, input_shape=(3, 32, 32), fc_out_features=(3072, 2048),
                 op_out_features=10, param_dtype=jnp.bfloat16):
        if fc_out_features is None:
            fc_out_features = []
        in_features = int(math.prod(input_shape))
        self.in_features = in_features
        self.out_features = int(op_out_features)

        dims = [in_features] + list(fc_out_features) + [int(op_out_features)]
        w_itemsize = jnp.dtype(param_dtype).itemsize

        self.k0_pad = _round_up(in_features, _LANE)
        self.layers = []
        k_pad = self.k0_pad
        for i in range(len(dims) - 1):
            fan_in, fan_out = dims[i], dims[i + 1]
            key, kw, kb = jax.random.split(key, 3)
            bound = 1.0 / math.sqrt(fan_in)
            # PyTorch nn.Linear default init: U(-1/sqrt(fan_in), 1/sqrt(fan_in)).
            # Stored transposed as (in, out) so the kernel computes x @ W + b.
            w = jax.random.uniform(kw, (fan_in, fan_out), jnp.float32, -bound, bound)
            b = jax.random.uniform(kb, (fan_out,), jnp.float32, -bound, bound)

            tn, _, n_pad = _choose_tiles(k_pad, fan_out, w_itemsize)
            w_pad = jnp.zeros((k_pad, n_pad), param_dtype)
            w_pad = w_pad.at[:fan_in, :fan_out].set(w.astype(param_dtype))
            b_pad = jnp.zeros((1, n_pad), jnp.float32).at[0, :fan_out].set(b)
            self.layers.append(dict(w=w_pad, b=b_pad, tn=tn,
                                    fan_in=fan_in, fan_out=fan_out))
            k_pad = n_pad   # next layer's (padded) input width

    def __call__(self, x):
        # x: (B, C, H, W) NCHW -> flatten start_dim=1 (row-major, matches torch)
        B = x.shape[0]
        h = x.reshape(B, -1).astype(jnp.bfloat16)
        Bp = _round_up(B, _SUBLANE_BF16)
        pad_b, pad_k = Bp - B, self.k0_pad - h.shape[1]
        if pad_b or pad_k:
            h = jnp.pad(h, ((0, pad_b), (0, pad_k)))

        n = len(self.layers)
        if n == 1:
            L = self.layers[0]
            out = pallas_linear(h, L["w"], L["b"], tn=L["tn"],
                                apply_relu=False, out_dtype=jnp.float32)
        else:
            # Early hidden layers: standalone Linear+ReLU kernels (bf16 out).
            for L in self.layers[: n - 2]:
                h = pallas_linear(h, L["w"], L["b"], tn=L["tn"],
                                  apply_relu=True, out_dtype=jnp.bfloat16)
            # Last hidden layer fused with the tiny final Linear.
            L1, L2 = self.layers[n - 2], self.layers[n - 1]
            out = pallas_linear_fused_tail(h, L1["w"], L1["b"], L2["w"], L2["b"],
                                           tn1=L1["tn"], out_dtype=jnp.float32)
        return out[:B, : self.out_features]


if __name__ == "__main__":
    key = jax.random.PRNGKey(0)
    key, kparams, kx = jax.random.split(key, 3)

    # Small shapes consistent with the module: batch=2, channels=4, spatial=16
    input_shape = (4, 16, 16)          # -> in_features = 1024
    fc_out_features = (512, 256)
    op_out_features = 10
    batch = 2

    model = FCHeadPallas(kparams, input_shape=input_shape,
                         fc_out_features=fc_out_features,
                         op_out_features=op_out_features)

    x = jax.random.normal(kx, (batch,) + input_shape, dtype=jnp.float32)

    out = model(x)
    out = jax.block_until_ready(out)

    # Plain-JAX reference of the same math (same bf16 weights, f32 accumulate,
    # hidden activations carried in bf16 exactly as the kernels do).
    h = x.reshape(batch, -1).astype(jnp.bfloat16)
    for i, L in enumerate(model.layers):
        w = L["w"][: L["fan_in"], : L["fan_out"]]
        b = L["b"][0, : L["fan_out"]]
        y = jnp.dot(h, w, preferred_element_type=jnp.float32) + b
        if i < len(model.layers) - 1:
            h = jnp.maximum(y, 0.0).astype(jnp.bfloat16)
        else:
            h = y
    ref = jax.block_until_ready(h)

    assert out.shape == (batch, op_out_features), out.shape
    assert jnp.allclose(out, ref, atol=1e-2, rtol=1e-2), "mismatch vs reference"

    print("KERNEL_OK")
</pallas_src>

<mosaic_0001>
module attributes {stable_mosaic.version = 11 : i64} {
  func.func @_linear_kernel(%arg0: i32, %arg1: memref<16x1024xbf16, #tpu.memory_space<vmem>>, %arg2: memref<1024x512xbf16, #tpu.memory_space<vmem>>, %arg3: memref<1x512xf32, #tpu.memory_space<vmem>>, %arg4: memref<16x512xbf16, #tpu.memory_space<vmem>>) attributes {dimension_semantics = [#tpu.dimension_semantics<parallel>], iteration_bounds = array<i64: 1>, scalar_prefetch = 0 : i64, scratch_operands = 0 : i64, tpu.core_type = #tpu.core_type<tc>, window_params = [{pipeline_mode = #tpu.pipeline_mode<synchronous>, transform_indices = @transform_0, window_bounds = array<i64: 16, 1024>}, {transform_indices = @transform_1, window_bounds = array<i64: 1024, 512>}, {transform_indices = @transform_2, window_bounds = array<i64: 1, 512>}, {transform_indices = @transform_3, window_bounds = array<i64: 16, 512>}]} {
    %c0 = arith.constant 0 : index
    %c0_0 = arith.constant 0 : index
    %0 = vector.load %arg1[%c0, %c0_0] : memref<16x1024xbf16, #tpu.memory_space<vmem>>, vector<16x1024xbf16>
    %c0_1 = arith.constant 0 : index
    %c0_2 = arith.constant 0 : index
    %1 = vector.load %arg2[%c0_1, %c0_2] : memref<1024x512xbf16, #tpu.memory_space<vmem>>, vector<1024x512xbf16>
    %cst = arith.constant dense<0.000000e+00> : vector<16x512xf32>
    %2 = tpu.matmul %0, %1, %cst {dimension_numbers = #tpu.dot_dimension_numbers<[1], [0], [0], [1], [0, 0, 1, 1], [], []>} : vector<16x1024xbf16>, vector<1024x512xbf16>, vector<16x512xf32> -> vector<16x512xf32>
    %c0_3 = arith.constant 0 : index
    %c0_4 = arith.constant 0 : index
    %3 = vector.load %arg3[%c0_3, %c0_4] : memref<1x512xf32, #tpu.memory_space<vmem>>, vector<1x512xf32>
    %4 = vector.broadcast %3 : vector<1x512xf32> to vector<16x512xf32>
    %5 = arith.addf %2, %4 : vector<16x512xf32>
    %cst_5 = arith.constant 0.000000e+00 : f32
    %6 = vector.broadcast %cst_5 : f32 to vector<16x512xf32>
    %7 = arith.maximumf %5, %6 : vector<16x512xf32>
    %8 = arith.truncf %7 : vector<16x512xf32> to vector<16x512xbf16>
    %c0_6 = arith.constant 0 : index
    %c0_7 = arith.constant 0 : index
    %9 = vector.load %arg4[%c0_6, %c0_7] : memref<16x512xbf16, #tpu.memory_space<vmem>>, vector<16x512xbf16>
    tpu.vector_store %arg4[%c0_6, %c0_7], %8 {strides = array<i32>} : memref<16x512xbf16, #tpu.memory_space<vmem>>, vector<16x512xbf16>,
    return
  }
  func.func @transform_0(%arg0: i32) -> (i32, i32) {
    %c0_i32 = arith.constant 0 : i32
    %c0_i32_0 = arith.constant 0 : i32
    %c0_i32_1 = arith.constant 0 : i32
    return %c0_i32, %c0_i32_0 : i32, i32
  }
  func.func @transform_1(%arg0: i32) -> (i32, i32) {
    %c0_i32 = arith.constant 0 : i32
    %c0_i32_0 = arith.constant 0 : i32
    return %c0_i32, %arg0 : i32, i32
  }
  func.func @transform_2(%arg0: i32) -> (i32, i32) {
    %c0_i32 = arith.constant 0 : i32
    %c0_i32_0 = arith.constant 0 : i32
    return %c0_i32, %arg0 : i32, i32
  }
  func.func @transform_3(%arg0: i32) -> (i32, i32) {
    %c0_i32 = arith.constant 0 : i32
    %c0_i32_0 = arith.constant 0 : i32
    return %c0_i32, %arg0 : i32, i32
  }
}

</mosaic_0001>

<bundles_post_ra>
// kernel: tpu_custom_call.1
= control target key start
LH: loop header
LB: loop body
LE: loop exit
PB: predicated region body
PF: predicated region fallthrough
CT: control target
= control target key end

     0   :  { %8 = vsyncpa [#allocation3], 0  ;;  %s2902_s0 = inlined_call_operand.hbm [shape: bf16[16,1024], index: 0, kind: input, shape index: {}]   ;;  %s2903_s1 = inlined_call_operand.hbm [shape: bf16[1024,512], index: 1, kind: input, shape index: {}]   ;;  %s2904_s2 = inlined_call_operand.hbm [shape: f32[1,512], index: 2, kind: input, shape index: {}]   ;;  %s2905_s3 = inlined_call_operand.hbm [shape: bf16[16,512], index: 3, kind: output, shape index: {}]  }
   0x1   :  { %9 = vsyncpa [#allocation6], 0 }
   0x2   :  { %10 = vsyncpa [#allocation4], 0  ;;  %s2808_s12 = smov [#allocation5]  }
   0x3   :  { %s28_s13 = sshll.u32 %s2808_s12, 4  ;;  %s29_s13 = int_to_ptr.vmem [resolvable:$true] %s28_s13 }
   0x4   :  { %s2730_s14 = scalar_lea.vmem %s29_s13, 32768  ;;  %p2735_p1 = scmp.lt.s32.totalorder %s29_s13, %s29_s13 }
   0x5   :  { %p2731_p0 = scmp.ne.s32.totalorder %s29_s13, %s2730_s14  ;;  %p2736_p2 = scmp.lt.s32.totalorder %s2730_s14, %s2730_s14 }
   0x7   :  { %p2737_p3 = por %p2736_p2, %p2735_p1 }
   0x9   :  { %p2738_p4 = pnand %p2737_p3, %p2731_p0 }
   0xb   :  { %2741 = shalt.err (!%p2738_p4)
}
   0xc   :  { %s2809_s15 = smov 256   ;;  %s2810_s16 = smov 16  }
   0xd   :  { %34 = dma.hbm_to_vmem [thread:$0]  %s2903_s1, 32768, %s29_s13, [#allocation6], %s2809_s15, %s2809_s15, %s2810_s16  }
   0xe   :  { %s2811_s19 = smov [#allocation2]  }
   0xf   :  { %s16_s20 = sshll.u32 %s2811_s19, 4  ;;  %s17_s20 = int_to_ptr.vmem [resolvable:$true] %s16_s20 }
  0x10   :  { %s2750_s21 = scalar_lea.vmem %s17_s20, 1024  ;;  %p2755_p6 = scmp.lt.s32.totalorder %s17_s20, %s17_s20 }
  0x11   :  { %p2751_p5 = scmp.ne.s32.totalorder %s17_s20, %s2750_s21  ;;  %p2756_p7 = scmp.lt.s32.totalorder %s2750_s21, %s2750_s21 }
  0x13   :  { %p2757_p8 = por %p2756_p7, %p2755_p6 }
  0x15   :  { %p2758_p9 = pnand %p2757_p8, %p2751_p5 }
  0x17   :  { %2761 = shalt.err (!%p2758_p9)
}
  0x18   :  { %s2812_s22 = smov 512   ;;  %s2813_s23 = smov 32  }
  0x19   :  { %22 = dma.hbm_to_vmem [thread:$0]  %s2902_s0, 1024, %s17_s20, [#allocation3], %s2812_s22, %s2812_s22, %s2813_s23  }
  0x1a   :  { %s2814_s26 = smov [#allocation7]  }
  0x1b   :  { %s41_s27 = sshll.u32 %s2814_s26, 4  ;;  %s42_s27 = int_to_ptr.vmem [resolvable:$true] %s41_s27 }
  0x1c   :  { %s2770_s1 = scalar_lea.vmem %s42_s27, 64  ;;  %p2775_p11 = scmp.lt.s32.totalorder %s42_s27, %s42_s27 }
  0x1d   :  { %p2771_p10 = scmp.ne.s32.totalorder %s42_s27, %s2770_s1  ;;  %p2776_p12 = scmp.lt.s32.totalorder %s2770_s1, %s2770_s1 }
  0x1f   :  { %p2777_p13 = por %p2776_p12, %p2775_p11 }
  0x21   :  { %p2778_p0 = pnand %p2777_p13, %p2771_p10 }
  0x23   :  { %2781 = shalt.err (!%p2778_p0)
}
  0x24   :  { %44 = dma.hbm_to_vmem [thread:$0]  %s2904_s2, 64, %s42_s27, [#allocation6]  }
  0x25   :  { %2802 = dma.done.wait [#allocation3], 1024  }
  0x26   :  { %2803 = vsyncadd [#allocation3], 4294966272 }
  0x27   :  { %2804 = dma.done.wait [#allocation6], 32832  }
  0x28   :  { %2805 = vsyncadd [#allocation6], 4294934464  ;;  %v2338_v0 = vld [vmem:[#allocation5 + $0xe4] ss:$16 sps:$4 sm:$0xff]   ;;  %v2342_v2 = vld [vmem:[#allocation5 + $0xe0] ss:$16 sps:$4 sm:$0xff]  }
  0x29   :  { %v2340_v1 = vld [vmem:[#allocation5 + $0x2e4] ss:$16 sps:$4 sm:$0xff]   ;;  %1660 = vmatprep.subr.bf16.mxu0 %v2338_v0  ;;  %v2343_v3 = vld [vmem:[#allocation5 + $0x2e0] ss:$16 sps:$4 sm:$0xff]   ;;  %v55_v50 = vld [vmem:[#allocation2 + $0x8] sm:$0xff]  ;;  %s2815_s0 = smov [#allocation8]  }
  0x2a   :  { %1703 = vmatprep.subr.bf16.mxu1 %v2340_v1  ;;  %v2344_v4 = vld [vmem:[#allocation5 + $0xc4] ss:$16 sps:$4 sm:$0xff]   ;;  %1661 = vmatpush1.bf16.msra.mxu0 %v2342_v2  ;;  %v2348_v6 = vld [vmem:[#allocation5 + $0xc0] ss:$16 sps:$4 sm:$0xff]   ;;  %v59_v51 = vld [vmem:[#allocation2 + $0x28] sm:$0xff]  ;;  %s2045_s2 = sshll.u32 %s2815_s0, 4  ;;  %s2046_s2 = int_to_ptr.vmem [resolvable:$true] %s2045_s2 }
  0x2b   :  { %1704 = vmatpush1.bf16.msra.mxu1 %v2343_v3  ;;  %v2346_v5 = vld [vmem:[#allocation5 + $0x2c4] ss:$16 sps:$4 sm:$0xff]   ;;  %1662 = vmatprep.subr.bf16.mxu0 %v2344_v4  ;;  %v2349_v7 = vld [vmem:[#allocation5 + $0x2c0] ss:$16 sps:$4 sm:$0xff]   ;;  %v2850_v55 = vcombine.high %v55_v50, %v59_v51  ;;  %s2782_s30 = scalar_lea.vmem %s2046_s2, 512  ;;  %p2787_p2 = scmp.lt.s32.totalorder %s2046_s2, %s2046_s2 }
  0x2c   :  { %1705 = vmatprep.subr.bf16.mxu1 %v2346_v5  ;;  %v2350_v8 = vld [vmem:[#allocation5 + $0xa4] ss:$16 sps:$4 sm:$0xff]   ;;  %v2354_v10 = vld [vmem:[#allocation5 + $0xa0] ss:$16 sps:$4 sm:$0xff]   ;;  %p2783_p1 = scmp.ne.s32.totalorder %s2046_s2, %s2782_s30  ;;  %p2788_p3 = scmp.lt.s32.totalorder %s2782_s30, %s2782_s30 }
  0x2d   :  { %v2352_v9 = vld [vmem:[#allocation5 + $0x2a4] ss:$16 sps:$4 sm:$0xff]   ;;  %v2355_v11 = vld [vmem:[#allocation5 + $0x2a0] ss:$16 sps:$4 sm:$0xff]   ;;  %1735 = vmatprep.mubr.bf16.mxu1 %v2850_v55 }
  0x2e   :  { %1663 = vmatpush1.bf16.msra.mxu0 %v2348_v6  ;;  %v2356_v12 = vld [vmem:[#allocation5 + $0x84] ss:$16 sps:$4 sm:$0xff]   ;;  %v2360_v14 = vld [vmem:[#allocation5 + $0x80] ss:$16 sps:$4 sm:$0xff]   ;;  %p2789_p4 = por %p2788_p3, %p2787_p2 }
  0x2f   :  { %1706 = vmatpush1.bf16.msra.mxu1 %v2349_v7  ;;  %1664 = vmatprep.subr.bf16.mxu0 %v2350_v8  ;;  %v2358_v13 = vld [vmem:[#allocation5 + $0x284] ss:$16 sps:$4 sm:$0xff]   ;;  %v2361_v15 = vld [vmem:[#allocation5 + $0x280] ss:$16 sps:$4 sm:$0xff]  }
  0x30   :  { %1707 = vmatprep.subr.bf16.mxu1 %v2352_v9  ;;  %v2362_v16 = vld [vmem:[#allocation5 + $0x64] ss:$16 sps:$4 sm:$0xff]   ;;  %v2366_v18 = vld [vmem:[#allocation5 + $0x60] ss:$16 sps:$4 sm:$0xff]   ;;  %v2856_v9 = vcombine.low %v55_v50, %v59_v51  ;;  %p2790_p5 = pnand %p2789_p4, %p2783_p1 }
  0x31   :  { %v2364_v17 = vld [vmem:[#allocation5 + $0x264] ss:$16 sps:$4 sm:$0xff]   ;;  %v2367_v19 = vld [vmem:[#allocation5 + $0x260] ss:$16 sps:$4 sm:$0xff]  }
  0x32   :  { %1665 = vmatpush1.bf16.msra.mxu0 %v2354_v10  ;;  %v2368_v20 = vld [vmem:[#allocation5 + $0x44] ss:$16 sps:$4 sm:$0xff]   ;;  %v2372_v22 = vld [vmem:[#allocation5 + $0x40] ss:$16 sps:$4 sm:$0xff]  }
  0x33   :  { %1708 = vmatpush1.bf16.msra.mxu1 %v2355_v11  ;;  %1666 = vmatprep.subr.bf16.mxu0 %v2356_v12  ;;  %v2370_v21 = vld [vmem:[#allocation5 + $0x244] ss:$16 sps:$4 sm:$0xff]   ;;  %v2373_v23 = vld [vmem:[#allocation5 + $0x240] ss:$16 sps:$4 sm:$0xff]  }
  0x34   :  { %1709 = vmatprep.subr.bf16.mxu1 %v2358_v13  ;;  %v2374_v24 = vld [vmem:[#allocation5 + $0x24] ss:$16 sps:$4 sm:$0xff]   ;;  %v2378_v26 = vld [vmem:[#allocation5 + $0x20] ss:$16 sps:$4 sm:$0xff]  }
  0x35   :  { %v2376_v25 = vld [vmem:[#allocation5 + $0x224] ss:$16 sps:$4 sm:$0xff]   ;;  %v2379_v27 = vld [vmem:[#allocation5 + $0x220] ss:$16 sps:$4 sm:$0xff]  }
  0x36   :  { %1667 = vmatpush1.bf16.msra.mxu0 %v2360_v14  ;;  %v2380_v28 = vld [vmem:[#allocation5 + $0x4] ss:$16 sps:$4 sm:$0xff]   ;;  %v2384_v30 = vld [vmem:[#allocation5] ss:$16 sps:$4 sm:$0xff]  }
  0x37   :  { %1710 = vmatpush1.bf16.msra.mxu1 %v2361_v15  ;;  %1668 = vmatprep.subr.bf16.mxu0 %v2362_v16  ;;  %v2382_v29 = vld [vmem:[#allocation5 + $0x204] ss:$16 sps:$4 sm:$0xff]   ;;  %v2385_v31 = vld [vmem:[#allocation5 + $0x200] ss:$16 sps:$4 sm:$0xff]  }
  0x38   :  { %1711 = vmatprep.subr.bf16.mxu1 %v2364_v17  ;;  %v2386_v32 = vld [vmem:[#allocation5 + $0x1e4] ss:$16 sps:$4 sm:$0xff]   ;;  %v2390_v34 = vld [vmem:[#allocation5 + $0x1e0] ss:$16 sps:$4 sm:$0xff]  }
  0x39   :  { %v2388_v33 = vld [vmem:[#allocation5 + $0x3e4] ss:$16 sps:$4 sm:$0xff]   ;;  %v2391_v35 = vld [vmem:[#allocation5 + $0x3e0] ss:$16 sps:$4 sm:$0xff]  }
  0x3a   :  { %1669 = vmatpush1.bf16.msra.mxu0 %v2366_v18  ;;  %v2392_v36 = vld [vmem:[#allocation5 + $0x1c4] ss:$16 sps:$4 sm:$0xff]   ;;  %v2396_v38 = vld [vmem:[#allocation5 + $0x1c0] ss:$16 sps:$4 sm:$0xff]  }
  0x3b   :  { %1712 = vmatpush1.bf16.msra.mxu1 %v2367_v19  ;;  %1670 = vmatprep.subr.bf16.mxu0 %v2368_v20  ;;  %v2394_v37 = vld [vmem:[#allocation5 + $0x3c4] ss:$16 sps:$4 sm:$0xff]   ;;  %v2397_v39 = vld [vmem:[#allocation5 + $0x3c0] ss:$16 sps:$4 sm:$0xff]  }
  0x3c   :  { %1713 = vmatprep.subr.bf16.mxu1 %v2370_v21  ;;  %v2398_v40 = vld [vmem:[#allocation5 + $0x1a4] ss:$16 sps:$4 sm:$0xff]   ;;  %v2402_v42 = vld [vmem:[#allocation5 + $0x1a0] ss:$16 sps:$4 sm:$0xff]  }
  0x3d   :  { %v2400_v41 = vld [vmem:[#allocation5 + $0x3a4] ss:$16 sps:$4 sm:$0xff]   ;;  %v2403_v43 = vld [vmem:[#allocation5 + $0x3a0] ss:$16 sps:$4 sm:$0xff]  }
  0x3e   :  { %1671 = vmatpush1.bf16.msra.mxu0 %v2372_v22  ;;  %v2404_v44 = vld [vmem:[#allocation5 + $0x184] ss:$16 sps:$4 sm:$0xff]   ;;  %v2408_v46 = vld [vmem:[#allocation5 + $0x180] ss:$16 sps:$4 sm:$0xff]  }
  0x3f   :  { %1714 = vmatpush1.bf16.msra.mxu1 %v2373_v23  ;;  %1672 = vmatprep.subr.bf16.mxu0 %v2374_v24  ;;  %v2406_v45 = vld [vmem:[#allocation5 + $0x384] ss:$16 sps:$4 sm:$0xff]   ;;  %v2409_v47 = vld [vmem:[#allocation5 + $0x380] ss:$16 sps:$4 sm:$0xff]  }
  0x40   :  { %1715 = vmatprep.subr.bf16.mxu1 %v2376_v25  ;;  %v54_v48 = vld [vmem:[#allocation2] sm:$0xff] }
  0x41   :  { %v58_v49 = vld [vmem:[#allocation2 + $0x20] sm:$0xff] }
  0x42   :  { %1673 = vmatpush1.bf16.msra.mxu0 %v2378_v26  ;;  %v2410_v52 = vld [vmem:[#allocation5 + $0x164] ss:$16 sps:$4 sm:$0xff]   ;;  %v2848_v53 = vcombine.high %v54_v48, %v58_v49  ;;  %v2414_v56 = vld [vmem:[#allocation5 + $0x160] ss:$16 sps:$4 sm:$0xff]   ;;  %v2854_v8 = vcombine.low %v54_v48, %v58_v49 }
  0x43   :  { %1716 = vmatpush1.bf16.msra.mxu1 %v2379_v27  ;;  %1674 = vmatprep.subr.bf16.mxu0 %v2380_v28  ;;  %v2412_v54 = vld [vmem:[#allocation5 + $0x364] ss:$16 sps:$4 sm:$0xff]   ;;  %v2415_v57 = vld [vmem:[#allocation5 + $0x360] ss:$16 sps:$4 sm:$0xff]  }
  0x44   :  { %1717 = vmatprep.subr.bf16.mxu1 %v2382_v29  ;;  %1692 = vmatprep.mubr.bf16.mxu0 %v2848_v53  ;;  %v2416_v58 = vld [vmem:[#allocation5 + $0x144] ss:$16 sps:$4 sm:$0xff]   ;;  %v2420_v60 = vld [vmem:[#allocation5 + $0x140] ss:$16 sps:$4 sm:$0xff]  }
  0x45   :  { %v2418_v59 = vld [vmem:[#allocation5 + $0x344] ss:$16 sps:$4 sm:$0xff]   ;;  %v2421_v61 = vld [vmem:[#allocation5 + $0x340] ss:$16 sps:$4 sm:$0xff]  }
  0x46   :  { %1675 = vmatpush1.bf16.msra.mxu0 %v2384_v30  ;;  %v2422_v62 = vld [vmem:[#allocation5 + $0x124] ss:$16 sps:$4 sm:$0xff]   ;;  %v2426_v0 = vld [vmem:[#allocation5 + $0x120] ss:$16 sps:$4 sm:$0xff]  }
  0x47   :  { %1718 = vmatpush1.bf16.msra.mxu1 %v2385_v31  ;;  %1676 = vmatprep.subr.bf16.mxu0 %v2386_v32  ;;  %v2424_v63 = vld [vmem:[#allocation5 + $0x324] ss:$16 sps:$4 sm:$0xff]   ;;  %v2427_v1 = vld [vmem:[#allocation5 + $0x320] ss:$16 sps:$4 sm:$0xff]  }
  0x48   :  { %1719 = vmatprep.subr.bf16.mxu1 %v2388_v33  ;;  %v2428_v2 = vld [vmem:[#allocation5 + $0x104] ss:$16 sps:$4 sm:$0xff]   ;;  %v2432_v4 = vld [vmem:[#allocation5 + $0x100] ss:$16 sps:$4 sm:$0xff]  }
  0x49   :  { %v2430_v3 = vld [vmem:[#allocation5 + $0x304] ss:$16 sps:$4 sm:$0xff]   ;;  %v2433_v5 = vld [vmem:[#allocation5 + $0x300] ss:$16 sps:$4 sm:$0xff]  }
  0x4a   :  { %1677 = vmatpush2.bf16.msra.mxu0 %v2390_v34  ;;  %v2436_v6 = vld [vmem:[#allocation5 + $0x4e4] ss:$16 sps:$4 sm:$0xff]   ;;  %v2434_v10 = vld [vmem:[#allocation5 + $0x4e0] ss:$16 sps:$4 sm:$0xff]  }
  0x4b   :  { %1720 = vmatpush2.bf16.msra.mxu1 %v2391_v35  ;;  %1678 = vmatprep.subr.bf16.mxu0 %v2392_v36  ;;  %v2439_v7 = vld [vmem:[#allocation5 + $0x6e4] ss:$16 sps:$4 sm:$0xff]   ;;  %v2437_v11 = vld [vmem:[#allocation5 + $0x6e0] ss:$16 sps:$4 sm:$0xff]  }
  0x4c   :  { %1721 = vmatprep.subr.bf16.mxu1 %v2394_v37  ;;  %v2442_v12 = vld [vmem:[#allocation5 + $0x4c4] ss:$16 sps:$4 sm:$0xff]   ;;  %v2440_v14 = vld [vmem:[#allocation5 + $0x4c0] ss:$16 sps:$4 sm:$0xff]  }
  0x4d   :  { %v2445_v13 = vld [vmem:[#allocation5 + $0x6c4] ss:$16 sps:$4 sm:$0xff]   ;;  %v2443_v15 = vld [vmem:[#allocation5 + $0x6c0] ss:$16 sps:$4 sm:$0xff]  }
  0x4e   :  { %1679 = vmatpush2.bf16.msra.mxu0 %v2396_v38  ;;  %v2448_v16 = vld [vmem:[#allocation5 + $0x4a4] ss:$16 sps:$4 sm:$0xff]   ;;  %v2446_v18 = vld [vmem:[#allocation5 + $0x4a0] ss:$16 sps:$4 sm:$0xff]   ;;  %v2864_v38 = vld [vmem:[#allocation2 + $0x18] sm:$0xff] }
  0x4f   :  { %1722 = vmatpush2.bf16.msra.mxu1 %v2397_v39  ;;  %1680 = vmatprep.subr.bf16.mxu0 %v2398_v40  ;;  %v2451_v17 = vld [vmem:[#allocation5 + $0x6a4] ss:$16 sps:$4 sm:$0xff]   ;;  %v2449_v19 = vld [vmem:[#allocation5 + $0x6a0] ss:$16 sps:$4 sm:$0xff]   ;;  %v2866_v39 = vld [vmem:[#allocation2 + $0x38] sm:$0xff] }
  0x50   :  { %1723 = vmatprep.subr.bf16.mxu1 %v2400_v41  ;;  %v2454_v20 = vld [vmem:[#allocation5 + $0x484] ss:$16 sps:$4 sm:$0xff]   ;;  %v2452_v22 = vld [vmem:[#allocation5 + $0x480] ss:$16 sps:$4 sm:$0xff]  }
  0x51   :  { %v2457_v21 = vld [vmem:[#allocation5 + $0x684] ss:$16 sps:$4 sm:$0xff]   ;;  %v2455_v23 = vld [vmem:[#allocation5 + $0x680] ss:$16 sps:$4 sm:$0xff]  }
  0x52   :  { %1681 = vmatpush2.bf16.msra.mxu0 %v2402_v42  ;;  %v2460_v24 = vld [vmem:[#allocation5 + $0x464] ss:$16 sps:$4 sm:$0xff]   ;;  %v2458_v26 = vld [vmem:[#allocation5 + $0x460] ss:$16 sps:$4 sm:$0xff]  }
  0x53   :  { %1724 = vmatpush2.bf16.msra.mxu1 %v2403_v43  ;;  %1682 = vmatprep.subr.bf16.mxu0 %v2404_v44  ;;  %v2463_v25 = vld [vmem:[#allocation5 + $0x664] ss:$16 sps:$4 sm:$0xff]   ;;  %v2461_v27 = vld [vmem:[#allocation5 + $0x660] ss:$16 sps:$4 sm:$0xff]   ;;  %v2874_v43 = vcombine.high %v2864_v38, %v2866_v39 }
  0x54   :  { %1725 = vmatprep.subr.bf16.mxu1 %v2406_v45  ;;  %v2466_v28 = vld [vmem:[#allocation5 + $0x444] ss:$16 sps:$4 sm:$0xff]   ;;  %v2464_v30 = vld [vmem:[#allocation5 + $0x440] ss:$16 sps:$4 sm:$0xff]  }
  0x55   :  { %v2469_v29 = vld [vmem:[#allocation5 + $0x644] ss:$16 sps:$4 sm:$0xff]   ;;  %v2467_v31 = vld [vmem:[#allocation5 + $0x640] ss:$16 sps:$4 sm:$0xff]  }
  0x56   :  { %1683 = vmatpush2.bf16.msra.mxu0 %v2408_v46  ;;  %v2472_v32 = vld [vmem:[#allocation5 + $0x424] ss:$16 sps:$4 sm:$0xff]   ;;  %v2470_v34 = vld [vmem:[#allocation5 + $0x420] ss:$16 sps:$4 sm:$0xff]  }
  0x57   :  { %1726 = vmatpush2.bf16.msra.mxu1 %v2409_v47  ;;  %1684 = vmatprep.subr.bf16.mxu0 %v2410_v52  ;;  %v2475_v33 = vld [vmem:[#allocation5 + $0x624] ss:$16 sps:$4 sm:$0xff]   ;;  %v2473_v35 = vld [vmem:[#allocation5 + $0x620] ss:$16 sps:$4 sm:$0xff]  }
  0x58   :  { %1727 = vmatprep.subr.bf16.mxu1 %v2412_v54  ;;  %v2860_v36 = vld [vmem:[#allocation2 + $0x10] sm:$0xff] }
  0x59   :  { %v2862_v37 = vld [vmem:[#allocation2 + $0x30] sm:$0xff] }
  0x5a   :  { %1685 = vmatpush2.bf16.msra.mxu0 %v2414_v56  ;;  %v2478_v40 = vld [vmem:[#allocation5 + $0x404] ss:$16 sps:$4 sm:$0xff]   ;;  %v2870_v41 = vcombine.high %v2860_v36, %v2862_v37  ;;  %v2476_v44 = vld [vmem:[#allocation5 + $0x400] ss:$16 sps:$4 sm:$0xff]  }
  0x5b   :  { %1728 = vmatpush2.bf16.msra.mxu1 %v2415_v57  ;;  %1686 = vmatprep.subr.bf16.mxu0 %v2416_v58  ;;  %v2481_v42 = vld [vmem:[#allocation5 + $0x604] ss:$16 sps:$4 sm:$0xff]   ;;  %v2479_v45 = vld [vmem:[#allocation5 + $0x600] ss:$16 sps:$4 sm:$0xff]  }
  0x5c   :  { %1729 = vmatprep.subr.bf16.mxu1 %v2418_v59  ;;  %v2484_v46 = vld [vmem:[#allocation5 + $0x5e4] ss:$16 sps:$4 sm:$0xff]   ;;  %v2482_v48 = vld [vmem:[#allocation5 + $0x5e0] ss:$16 sps:$4 sm:$0xff]  }
  0x5d   :  { %v2487_v47 = vld [vmem:[#allocation5 + $0x7e4] ss:$16 sps:$4 sm:$0xff]   ;;  %v2485_v49 = vld [vmem:[#allocation5 + $0x7e0] ss:$16 sps:$4 sm:$0xff]  }
  0x5e   :  { %1687 = vmatpush2.bf16.msra.mxu0 %v2420_v60  ;;  %v2490_v50 = vld [vmem:[#allocation5 + $0x5c4] ss:$16 sps:$4 sm:$0xff]   ;;  %v2488_v52 = vld [vmem:[#allocation5 + $0x5c0] ss:$16 sps:$4 sm:$0xff]  }
  0x5f   :  { %1730 = vmatpush2.bf16.msra.mxu1 %v2421_v61  ;;  %1688 = vmatprep.subr.bf16.mxu0 %v2422_v62  ;;  %v2493_v51 = vld [vmem:[#allocation5 + $0x7c4] ss:$16 sps:$4 sm:$0xff]   ;;  %v2491_v54 = vld [vmem:[#allocation5 + $0x7c0] ss:$16 sps:$4 sm:$0xff]  }
  0x60   :  { %1731 = vmatprep.subr.bf16.mxu1 %v2424_v63  ;;  %v2496_v56 = vld [vmem:[#allocation5 + $0x5a4] ss:$16 sps:$4 sm:$0xff]   ;;  %v2494_v58 = vld [vmem:[#allocation5 + $0x5a0] ss:$16 sps:$4 sm:$0xff]  }
  0x61   :  { %v2499_v57 = vld [vmem:[#allocation5 + $0x7a4] ss:$16 sps:$4 sm:$0xff]   ;;  %v2497_v59 = vld [vmem:[#allocation5 + $0x7a0] ss:$16 sps:$4 sm:$0xff]  }
  0x62   :  { %1689 = vmatpush2.bf16.msra.mxu0 %v2426_v0  ;;  %v2502_v60 = vld [vmem:[#allocation5 + $0x584] ss:$16 sps:$4 sm:$0xff]   ;;  %v2500_v62 = vld [vmem:[#allocation5 + $0x580] ss:$16 sps:$4 sm:$0xff]  }
  0x63   :  { %1732 = vmatpush2.bf16.msra.mxu1 %v2427_v1  ;;  %1690 = vmatprep.subr.bf16.mxu0 %v2428_v2  ;;  %v2505_v61 = vld [vmem:[#allocation5 + $0x784] ss:$16 sps:$4 sm:$0xff]   ;;  %v2503_v63 = vld [vmem:[#allocation5 + $0x780] ss:$16 sps:$4 sm:$0xff]  }
  0x64   :  { %1733 = vmatprep.subr.bf16.mxu1 %v2430_v3  ;;  %v2508_v0 = vld [vmem:[#allocation5 + $0x564] ss:$16 sps:$4 sm:$0xff]   ;;  %v2506_v2 = vld [vmem:[#allocation5 + $0x560] ss:$16 sps:$4 sm:$0xff]  }
  0x65   :  { %v2511_v1 = vld [vmem:[#allocation5 + $0x764] ss:$16 sps:$4 sm:$0xff]   ;;  %v2509_v3 = vld [vmem:[#allocation5 + $0x760] ss:$16 sps:$4 sm:$0xff]  }
  0x66   :  { %1691 = vmatpush2.bf16.msra.mxu0 %v2432_v4  ;;  %v2514_v4 = vld [vmem:[#allocation5 + $0x544] ss:$16 sps:$4 sm:$0xff]  }
  0x67   :  { %1734 = vmatpush2.bf16.msra.mxu1 %v2433_v5  ;;  %1746 = vmatprep.subr.bf16.mxu0 %v2436_v6  ;;  %v2517_v5 = vld [vmem:[#allocation5 + $0x744] ss:$16 sps:$4 sm:$0xff]   ;;  %v2512_v6 = vld [vmem:[#allocation5 + $0x540] ss:$16 sps:$4 sm:$0xff]  }
  0x68   :  { %1789 = vmatprep.subr.bf16.mxu1 %v2439_v7  ;;  %v2515_v7 = vld [vmem:[#allocation5 + $0x740] ss:$16 sps:$4 sm:$0xff]  }
  0x69   :  { %1693 = vmatmul.mubr.bf16.vlgmr.msra.gmra.mxu0 %v2854_v8 }
  0x6a   :  { %1736 = vmatmul.mubr.bf16.vlgmr.msra.gmra.mxu1 %v2856_v9  ;;  %1747 = vmatpush1.bf16.msra.mxu0 %v2434_v10  ;;  %v2520_v10 = vld [vmem:[#allocation5 + $0x524] ss:$16 sps:$4 sm:$0xff]  }
  0x6b   :  { %1790 = vmatpush1.bf16.msra.mxu1 %v2437_v11  ;;  %1748 = vmatprep.subr.bf16.mxu0 %v2442_v12  ;;  %v2523_v11 = vld [vmem:[#allocation5 + $0x724] ss:$16 sps:$4 sm:$0xff]   ;;  %v2518_v12 = vld [vmem:[#allocation5 + $0x520] ss:$16 sps:$4 sm:$0xff]  }
  0x6c   :  { %1791 = vmatprep.subr.bf16.mxu1 %v2445_v13  ;;  %1778 = vmatprep.mubr.bf16.mxu0 %v2870_v41  ;;  %v2521_v13 = vld [vmem:[#allocation5 + $0x720] ss:$16 sps:$4 sm:$0xff]  }
  0x6d   :  { %1821 = vmatprep.mubr.bf16.mxu1 %v2874_v43 }
  0x6e   :  { %1749 = vmatpush1.bf16.msra.mxu0 %v2440_v14  ;;  %v2526_v14 = vld [vmem:[#allocation5 + $0x504] ss:$16 sps:$4 sm:$0xff]  }
  0x6f   :  { %1792 = vmatpush1.bf16.msra.mxu1 %v2443_v15  ;;  %1750 = vmatprep.subr.bf16.mxu0 %v2448_v16  ;;  %v2529_v15 = vld [vmem:[#allocation5 + $0x704] ss:$16 sps:$4 sm:$0xff]   ;;  %v2524_v16 = vld [vmem:[#allocation5 + $0x500] ss:$16 sps:$4 sm:$0xff]  }
  0x70   :  { %1793 = vmatprep.subr.bf16.mxu1 %v2451_v17  ;;  %v2527_v17 = vld [vmem:[#allocation5 + $0x700] ss:$16 sps:$4 sm:$0xff]  }
  0x72   :  { %1751 = vmatpush1.bf16.msra.mxu0 %v2446_v18  ;;  %v2532_v18 = vld [vmem:[#allocation5 + $0xec] ss:$16 sps:$4 sm:$0xff]  }
  0x73   :  { %1794 = vmatpush1.bf16.msra.mxu1 %v2449_v19  ;;  %1752 = vmatprep.subr.bf16.mxu0 %v2454_v20  ;;  %v2535_v19 = vld [vmem:[#allocation5 + $0x2ec] ss:$16 sps:$4 sm:$0xff]   ;;  %v2880_v20 = vcombine.low %v2860_v36, %v2862_v37 }
  0x74   :  { %1795 = vmatprep.subr.bf16.mxu1 %v2457_v21  ;;  %v2884_v21 = vcombine.low %v2864_v38, %v2866_v39  ;;  %v2556_v36 = vld [vmem:[#allocation5 + $0x6c] ss:$16 sps:$4 sm:$0xff]   ;;  %v2554_v38 = vld [vmem:[#allocation5 + $0x68] ss:$16 sps:$4 sm:$0xff]  }
  0x75   :  { %v2559_v37 = vld [vmem:[#allocation5 + $0x26c] ss:$16 sps:$4 sm:$0xff]  }
  0x76   :  { %1753 = vmatpush1.bf16.msra.mxu0 %v2452_v22  ;;  %v2530_v22 = vld [vmem:[#allocation5 + $0xe8] ss:$16 sps:$4 sm:$0xff]   ;;  %v2565_v39 = vld [vmem:[#allocation5 + $0x24c] ss:$16 sps:$4 sm:$0xff]  }
  0x77   :  { %1796 = vmatpush1.bf16.msra.mxu1 %v2455_v23  ;;  %1754 = vmatprep.subr.bf16.mxu0 %v2460_v24  ;;  %v2533_v23 = vld [vmem:[#allocation5 + $0x2e8] ss:$16 sps:$4 sm:$0xff]   ;;  %v2538_v24 = vld [vmem:[#allocation5 + $0xcc] ss:$16 sps:$4 sm:$0xff]  }
  0x78   :  { %1797 = vmatprep.subr.bf16.mxu1 %v2463_v25  ;;  %v2541_v25 = vld [vmem:[#allocation5 + $0x2cc] ss:$16 sps:$4 sm:$0xff]  }
  0x7a   :  { %1755 = vmatpush1.bf16.msra.mxu0 %v2458_v26  ;;  %v2536_v26 = vld [vmem:[#allocation5 + $0xc8] ss:$16 sps:$4 sm:$0xff]  }
  0x7b   :  { %1798 = vmatpush1.bf16.msra.mxu1 %v2461_v27  ;;  %1756 = vmatprep.subr.bf16.mxu0 %v2466_v28  ;;  %v2539_v27 = vld [vmem:[#allocation5 + $0x2c8] ss:$16 sps:$4 sm:$0xff]   ;;  %v2544_v28 = vld [vmem:[#allocation5 + $0xac] ss:$16 sps:$4 sm:$0xff]  }
  0x7c   :  { %1799 = vmatprep.subr.bf16.mxu1 %v2469_v29  ;;  %v2547_v29 = vld [vmem:[#allocation5 + $0x2ac] ss:$16 sps:$4 sm:$0xff]  }
  0x7e   :  { %1757 = vmatpush1.bf16.msra.mxu0 %v2464_v30  ;;  %v2542_v30 = vld [vmem:[#allocation5 + $0xa8] ss:$16 sps:$4 sm:$0xff]  }
  0x7f   :  { %1800 = vmatpush1.bf16.msra.mxu1 %v2467_v31  ;;  %1758 = vmatprep.subr.bf16.mxu0 %v2472_v32  ;;  %v2545_v31 = vld [vmem:[#allocation5 + $0x2a8] ss:$16 sps:$4 sm:$0xff]   ;;  %v2550_v32 = vld [vmem:[#allocation5 + $0x8c] ss:$16 sps:$4 sm:$0xff]  }
  0x80   :  { %1801 = vmatprep.subr.bf16.mxu1 %v2475_v33  ;;  %v2553_v33 = vld [vmem:[#allocation5 + $0x28c] ss:$16 sps:$4 sm:$0xff]  }
  0x82   :  { %1759 = vmatpush1.bf16.msra.mxu0 %v2470_v34  ;;  %v2548_v34 = vld [vmem:[#allocation5 + $0x88] ss:$16 sps:$4 sm:$0xff]  }
  0x83   :  { %1802 = vmatpush1.bf16.msra.mxu1 %v2473_v35  ;;  %1760 = vmatprep.subr.bf16.mxu0 %v2478_v40  ;;  %v2551_v35 = vld [vmem:[#allocation5 + $0x288] ss:$16 sps:$4 sm:$0xff]  }
  0x84   :  { %1803 = vmatprep.subr.bf16.mxu1 %v2481_v42  ;;  %v2560_v40 = vld [vmem:[#allocation5 + $0x48] ss:$16 sps:$4 sm:$0xff]  }
  0x85   :  { %v2563_v42 = vld [vmem:[#allocation5 + $0x248] ss:$16 sps:$4 sm:$0xff]  }
  0x86   :  { %1761 = vmatpush1.bf16.msra.mxu0 %v2476_v44  ;;  %v2568_v44 = vld [vmem:[#allocation5 + $0x2c] ss:$16 sps:$4 sm:$0xff]  }
  0x87   :  { %1804 = vmatpush1.bf16.msra.mxu1 %v2479_v45  ;;  %1762 = vmatprep.subr.bf16.mxu0 %v2484_v46  ;;  %v2571_v45 = vld [vmem:[#allocation5 + $0x22c] ss:$16 sps:$4 sm:$0xff]   ;;  %v2566_v46 = vld [vmem:[#allocation5 + $0x28] ss:$16 sps:$4 sm:$0xff]  }
  0x88   :  { %1805 = vmatprep.subr.bf16.mxu1 %v2487_v47  ;;  %v2569_v47 = vld [vmem:[#allocation5 + $0x228] ss:$16 sps:$4 sm:$0xff]  }
  0x8a   :  { %1763 = vmatpush2.bf16.msra.mxu0 %v2482_v48  ;;  %v2574_v48 = vld [vmem:[#allocation5 + $0xc] ss:$16 sps:$4 sm:$0xff]  }
  0x8b   :  { %1806 = vmatpush2.bf16.msra.mxu1 %v2485_v49  ;;  %1764 = vmatprep.subr.bf16.mxu0 %v2490_v50  ;;  %v2577_v49 = vld [vmem:[#allocation5 + $0x20c] ss:$16 sps:$4 sm:$0xff]   ;;  %v2572_v50 = vld [vmem:[#allocation5 + $0x8] ss:$16 sps:$4 sm:$0xff]  }
  0x8c   :  { %1807 = vmatprep.subr.bf16.mxu1 %v2493_v51  ;;  %v2575_v51 = vld [vmem:[#allocation5 + $0x208] ss:$16 sps:$4 sm:$0xff]  }
  0x8e   :  { %1765 = vmatpush2.bf16.msra.mxu0 %v2488_v52  ;;  %v2580_v52 = vld [vmem:[#allocation5 + $0x1ec] ss:$16 sps:$4 sm:$0xff]  }
  0x8f   :  { %1808 = vmatpush2.bf16.msra.mxu1 %v2491_v54  ;;  %1766 = vmatprep.subr.bf16.mxu0 %v2496_v56  ;;  %v2583_v54 = vld [vmem:[#allocation5 + $0x3ec] ss:$16 sps:$4 sm:$0xff]   ;;  %v2578_v56 = vld [vmem:[#allocation5 + $0x1e8] ss:$16 sps:$4 sm:$0xff]  }
  0x90   :  { %1809 = vmatprep.subr.bf16.mxu1 %v2499_v57  ;;  %v2581_v57 = vld [vmem:[#allocation5 + $0x3e8] ss:$16 sps:$4 sm:$0xff]  }
  0x92   :  { %1767 = vmatpush2.bf16.msra.mxu0 %v2494_v58  ;;  %v2586_v58 = vld [vmem:[#allocation5 + $0x1cc] ss:$16 sps:$4 sm:$0xff]  }
  0x93   :  { %1810 = vmatpush2.bf16.msra.mxu1 %v2497_v59  ;;  %1768 = vmatprep.subr.bf16.mxu0 %v2502_v60  ;;  %v2589_v59 = vld [vmem:[#allocation5 + $0x3cc] ss:$16 sps:$4 sm:$0xff]   ;;  %v2584_v60 = vld [vmem:[#allocation5 + $0x1c8] ss:$16 sps:$4 sm:$0xff]  }
  0x94   :  { %1811 = vmatprep.subr.bf16.mxu1 %v2505_v61  ;;  %v2587_v61 = vld [vmem:[#allocation5 + $0x3c8] ss:$16 sps:$4 sm:$0xff]  }
  0x96   :  { %1769 = vmatpush2.bf16.msra.mxu0 %v2500_v62  ;;  %v2592_v62 = vld [vmem:[#allocation5 + $0x1ac] ss:$16 sps:$4 sm:$0xff]  }
  0x97   :  { %1812 = vmatpush2.bf16.msra.mxu1 %v2503_v63  ;;  %1770 = vmatprep.subr.bf16.mxu0 %v2508_v0  ;;  %v2595_v63 = vld [vmem:[#allocation5 + $0x3ac] ss:$16 sps:$4 sm:$0xff]   ;;  %v2590_v0 = vld [vmem:[#allocation5 + $0x1a8] ss:$16 sps:$4 sm:$0xff]  }
  0x98   :  { %1813 = vmatprep.subr.bf16.mxu1 %v2511_v1  ;;  %v2593_v1 = vld [vmem:[#allocation5 + $0x3a8] ss:$16 sps:$4 sm:$0xff]  }
  0x9a   :  { %1771 = vmatpush2.bf16.msra.mxu0 %v2506_v2  ;;  %v2598_v2 = vld [vmem:[#allocation5 + $0x18c] ss:$16 sps:$4 sm:$0xff]  }
  0x9b   :  { %1814 = vmatpush2.bf16.msra.mxu1 %v2509_v3  ;;  %1772 = vmatprep.subr.bf16.mxu0 %v2514_v4  ;;  %v2601_v3 = vld [vmem:[#allocation5 + $0x38c] ss:$16 sps:$4 sm:$0xff]   ;;  %v2596_v4 = vld [vmem:[#allocation5 + $0x188] ss:$16 sps:$4 sm:$0xff]  }
  0x9c   :  { %1815 = vmatprep.subr.bf16.mxu1 %v2517_v5  ;;  %v2599_v5 = vld [vmem:[#allocation5 + $0x388] ss:$16 sps:$4 sm:$0xff]  }
  0x9e   :  { %1773 = vmatpush2.bf16.msra.mxu0 %v2512_v6  ;;  %v2604_v6 = vld [vmem:[#allocation5 + $0x16c] ss:$16 sps:$4 sm:$0xff]  }
  0x9f   :  { %1816 = vmatpush2.bf16.msra.mxu1 %v2515_v7  ;;  %1774 = vmatprep.subr.bf16.mxu0 %v2520_v10  ;;  %v2607_v7 = vld [vmem:[#allocation5 + $0x36c] ss:$16 sps:$4 sm:$0xff]   ;;  %v2602_v10 = vld [vmem:[#allocation5 + $0x168] ss:$16 sps:$4 sm:$0xff]  }
  0xa0   :  { %1817 = vmatprep.subr.bf16.mxu1 %v2523_v11  ;;  %v2605_v11 = vld [vmem:[#allocation5 + $0x368] ss:$16 sps:$4 sm:$0xff]  }
  0xa2   :  { %1775 = vmatpush2.bf16.msra.mxu0 %v2518_v12  ;;  %v2610_v12 = vld [vmem:[#allocation5 + $0x14c] ss:$16 sps:$4 sm:$0xff]  }
  0xa3   :  { %1818 = vmatpush2.bf16.msra.mxu1 %v2521_v13  ;;  %1776 = vmatprep.subr.bf16.mxu0 %v2526_v14  ;;  %v2613_v13 = vld [vmem:[#allocation5 + $0x34c] ss:$16 sps:$4 sm:$0xff]   ;;  %v2608_v14 = vld [vmem:[#allocation5 + $0x148] ss:$16 sps:$4 sm:$0xff]  }
  0xa4   :  { %1819 = vmatprep.subr.bf16.mxu1 %v2529_v15  ;;  %v2611_v15 = vld [vmem:[#allocation5 + $0x348] ss:$16 sps:$4 sm:$0xff]  }
  0xa6   :  { %1777 = vmatpush2.bf16.msra.mxu0 %v2524_v16  ;;  %v2616_v16 = vld [vmem:[#allocation5 + $0x12c] ss:$16 sps:$4 sm:$0xff]  }
  0xa7   :  { %1820 = vmatpush2.bf16.msra.mxu1 %v2527_v17  ;;  %1832 = vmatprep.subr.bf16.mxu0 %v2532_v18  ;;  %v2619_v17 = vld [vmem:[#allocation5 + $0x32c] ss:$16 sps:$4 sm:$0xff]   ;;  %v2614_v18 = vld [vmem:[#allocation5 + $0x128] ss:$16 sps:$4 sm:$0xff]  }
  0xa8   :  { %1875 = vmatprep.subr.bf16.mxu1 %v2535_v19  ;;  %v2617_v19 = vld [vmem:[#allocation5 + $0x328] ss:$16 sps:$4 sm:$0xff]  }
  0xa9   :  { %1779 = vmatmul.mubr.bf16.vlgmr.msra.gmra.mxu0 %v2880_v20 }
  0xaa   :  { %1822 = vmatmul.mubr.bf16.vlgmr.msra.gmra.mxu1 %v2884_v21  ;;  %1833 = vmatpush1.bf16.msra.mxu0 %v2530_v22  ;;  %v2622_v22 = vld [vmem:[#allocation5 + $0x10c] ss:$16 sps:$4 sm:$0xff]  }
  0xab   :  { %1876 = vmatpush1.bf16.msra.mxu1 %v2533_v23  ;;  %1834 = vmatprep.subr.bf16.mxu0 %v2538_v24  ;;  %v2625_v23 = vld [vmem:[#allocation5 + $0x30c] ss:$16 sps:$4 sm:$0xff]   ;;  %v2620_v24 = vld [vmem:[#allocation5 + $0x108] ss:$16 sps:$4 sm:$0xff]  }
  0xac   :  { %1877 = vmatprep.subr.bf16.mxu1 %v2541_v25  ;;  %1864 = vmatprep.mubr.bf16.mxu0 %v2848_v53  ;;  %v2557_v53 = vld [vmem:[#allocation5 + $0x268] ss:$16 sps:$4 sm:$0xff]  }
  0xad   :  { %1907 = vmatprep.mubr.bf16.mxu1 %v2850_v55  ;;  %v2562_v55 = vld [vmem:[#allocation5 + $0x4c] ss:$16 sps:$4 sm:$0xff]   ;;  %v2623_v25 = vld [vmem:[#allocation5 + $0x308] ss:$16 sps:$4 sm:$0xff]  }
  0xae   :  { %1835 = vmatpush1.bf16.msra.mxu0 %v2536_v26  ;;  %v2628_v26 = vld [vmem:[#allocation5 + $0x4ec] ss:$16 sps:$4 sm:$0xff]  }
  0xaf   :  { %1878 = vmatpush1.bf16.msra.mxu1 %v2539_v27  ;;  %1836 = vmatprep.subr.bf16.mxu0 %v2544_v28  ;;  %v2631_v27 = vld [vmem:[#allocation5 + $0x6ec] ss:$16 sps:$4 sm:$0xff]   ;;  %v2626_v28 = vld [vmem:[#allocation5 + $0x4e8] ss:$16 sps:$4 sm:$0xff]  }
  0xb0   :  { %1879 = vmatprep.subr.bf16.mxu1 %v2547_v29  ;;  %v2629_v29 = vld [vmem:[#allocation5 + $0x6e8] ss:$16 sps:$4 sm:$0xff]  }
  0xb2   :  { %1837 = vmatpush1.bf16.msra.mxu0 %v2542_v30  ;;  %v2634_v30 = vld [vmem:[#allocation5 + $0x4cc] ss:$16 sps:$4 sm:$0xff]  }
  0xb3   :  { %1880 = vmatpush1.bf16.msra.mxu1 %v2545_v31  ;;  %1838 = vmatprep.subr.bf16.mxu0 %v2550_v32  ;;  %v2637_v31 = vld [vmem:[#allocation5 + $0x6cc] ss:$16 sps:$4 sm:$0xff]   ;;  %v2632_v32 = vld [vmem:[#allocation5 + $0x4c8] ss:$16 sps:$4 sm:$0xff]  }
  0xb4   :  { %1881 = vmatprep.subr.bf16.mxu1 %v2553_v33  ;;  %v2635_v33 = vld [vmem:[#allocation5 + $0x6c8] ss:$16 sps:$4 sm:$0xff]  }
  0xb6   :  { %1839 = vmatpush1.bf16.msra.mxu0 %v2548_v34  ;;  %v2640_v34 = vld [vmem:[#allocation5 + $0x4ac] ss:$16 sps:$4 sm:$0xff]  }
  0xb7   :  { %1882 = vmatpush1.bf16.msra.mxu1 %v2551_v35  ;;  %1840 = vmatprep.subr.bf16.mxu0 %v2556_v36  ;;  %v2643_v35 = vld [vmem:[#allocation5 + $0x6ac] ss:$16 sps:$4 sm:$0xff]   ;;  %v2638_v36 = vld [vmem:[#allocation5 + $0x4a8] ss:$16 sps:$4 sm:$0xff]  }
  0xb8   :  { %1883 = vmatprep.subr.bf16.mxu1 %v2559_v37  ;;  %v2641_v37 = vld [vmem:[#allocation5 + $0x6a8] ss:$16 sps:$4 sm:$0xff]  }
  0xba   :  { %1841 = vmatpush1.bf16.msra.mxu0 %v2554_v38  ;;  %v2644_v38 = vld [vmem:[#allocation5 + $0x488] ss:$16 sps:$4 sm:$0xff]  }
  0xbb   :  { %1884 = vmatpush1.bf16.msra.mxu1 %v2557_v53  ;;  %1842 = vmatprep.subr.bf16.mxu0 %v2562_v55  ;;  %v2647_v53 = vld [vmem:[#allocation5 + $0x688] ss:$16 sps:$4 sm:$0xff]   ;;  %v2652_v55 = vld [vmem:[#allocation5 + $0x46c] ss:$16 sps:$4 sm:$0xff]  }
  0xbc   :  { %1885 = vmatprep.subr.bf16.mxu1 %v2565_v39  ;;  %v2655_v39 = vld [vmem:[#allocation5 + $0x66c] ss:$16 sps:$4 sm:$0xff]  }
  0xbe   :  { %1843 = vmatpush1.bf16.msra.mxu0 %v2560_v40  ;;  %v2658_v40 = vld [vmem:[#allocation5 + $0x44c] ss:$16 sps:$4 sm:$0xff]  }
  0xbf   :  { %1886 = vmatpush1.bf16.msra.mxu1 %v2563_v42  ;;  %1844 = vmatprep.subr.bf16.mxu0 %v2568_v44  ;;  %v2661_v42 = vld [vmem:[#allocation5 + $0x64c] ss:$16 sps:$4 sm:$0xff]   ;;  %v2656_v44 = vld [vmem:[#allocation5 + $0x448] ss:$16 sps:$4 sm:$0xff]  }
  0xc0   :  { %1887 = vmatprep.subr.bf16.mxu1 %v2571_v45  ;;  %v2659_v45 = vld [vmem:[#allocation5 + $0x648] ss:$16 sps:$4 sm:$0xff]  }
  0xc2   :  { %1845 = vmatpush1.bf16.msra.mxu0 %v2566_v46  ;;  %v2664_v46 = vld [vmem:[#allocation5 + $0x42c] ss:$16 sps:$4 sm:$0xff]  }
  0xc3   :  { %1888 = vmatpush1.bf16.msra.mxu1 %v2569_v47  ;;  %1846 = vmatprep.subr.bf16.mxu0 %v2574_v48  ;;  %v2667_v47 = vld [vmem:[#allocation5 + $0x62c] ss:$16 sps:$4 sm:$0xff]   ;;  %v2662_v48 = vld [vmem:[#allocation5 + $0x428] ss:$16 sps:$4 sm:$0xff]  }
  0xc4   :  { %1889 = vmatprep.subr.bf16.mxu1 %v2577_v49  ;;  %v2665_v49 = vld [vmem:[#allocation5 + $0x628] ss:$16 sps:$4 sm:$0xff]  }
  0xc6   :  { %1847 = vmatpush1.bf16.msra.mxu0 %v2572_v50  ;;  %v2670_v50 = vld [vmem:[#allocation5 + $0x40c] ss:$16 sps:$4 sm:$0xff]  }
  0xc7   :  { %1890 = vmatpush1.bf16.msra.mxu1 %v2575_v51  ;;  %1848 = vmatprep.subr.bf16.mxu0 %v2580_v52  ;;  %v2673_v51 = vld [vmem:[#allocation5 + $0x60c] ss:$16 sps:$4 sm:$0xff]   ;;  %v2668_v52 = vld [vmem:[#allocation5 + $0x408] ss:$16 sps:$4 sm:$0xff]  }
  0xc8   :  { %1891 = vmatprep.subr.bf16.mxu1 %v2583_v54  ;;  %v2671_v54 = vld [vmem:[#allocation5 + $0x608] ss:$16 sps:$4 sm:$0xff]  }
  0xca   :  { %1849 = vmatpush2.bf16.msra.mxu0 %v2578_v56  ;;  %v2676_v56 = vld [vmem:[#allocation5 + $0x5ec] ss:$16 sps:$4 sm:$0xff]  }
  0xcb   :  { %1892 = vmatpush2.bf16.msra.mxu1 %v2581_v57  ;;  %1850 = vmatprep.subr.bf16.mxu0 %v2586_v58  ;;  %v2679_v57 = vld [vmem:[#allocation5 + $0x7ec] ss:$16 sps:$4 sm:$0xff]   ;;  %v2674_v58 = vld [vmem:[#allocation5 + $0x5e8] ss:$16 sps:$4 sm:$0xff]  }
  0xcc   :  { %1893 = vmatprep.subr.bf16.mxu1 %v2589_v59  ;;  %v2677_v59 = vld [vmem:[#allocation5 + $0x7e8] ss:$16 sps:$4 sm:$0xff]  }
  0xce   :  { %1851 = vmatpush2.bf16.msra.mxu0 %v2584_v60  ;;  %v2682_v60 = vld [vmem:[#allocation5 + $0x5cc] ss:$16 sps:$4 sm:$0xff]  }
  0xcf   :  { %1894 = vmatpush2.bf16.msra.mxu1 %v2587_v61  ;;  %1852 = vmatprep.subr.bf16.mxu0 %v2592_v62  ;;  %v2685_v61 = vld [vmem:[#allocation5 + $0x7cc] ss:$16 sps:$4 sm:$0xff]   ;;  %v2680_v62 = vld [vmem:[#allocation5 + $0x5c8] ss:$16 sps:$4 sm:$0xff]  }
  0xd0   :  { %1895 = vmatprep.subr.bf16.mxu1 %v2595_v63  ;;  %v2683_v63 = vld [vmem:[#allocation5 + $0x7c8] ss:$16 sps:$4 sm:$0xff]  }
  0xd2   :  { %1853 = vmatpush2.bf16.msra.mxu0 %v2590_v0  ;;  %v2688_v0 = vld [vmem:[#allocation5 + $0x5ac] ss:$16 sps:$4 sm:$0xff]  }
  0xd3   :  { %1896 = vmatpush2.bf16.msra.mxu1 %v2593_v1  ;;  %1854 = vmatprep.subr.bf16.mxu0 %v2598_v2  ;;  %v2691_v1 = vld [vmem:[#allocation5 + $0x7ac] ss:$16 sps:$4 sm:$0xff]   ;;  %v2686_v2 = vld [vmem:[#allocation5 + $0x5a8] ss:$16 sps:$4 sm:$0xff]  }
  0xd4   :  { %1897 = vmatprep.subr.bf16.mxu1 %v2601_v3  ;;  %v2689_v3 = vld [vmem:[#allocation5 + $0x7a8] ss:$16 sps:$4 sm:$0xff]  }
  0xd6   :  { %1855 = vmatpush2.bf16.msra.mxu0 %v2596_v4  ;;  %v2694_v4 = vld [vmem:[#allocation5 + $0x58c] ss:$16 sps:$4 sm:$0xff]  }
  0xd7   :  { %1898 = vmatpush2.bf16.msra.mxu1 %v2599_v5  ;;  %1856 = vmatprep.subr.bf16.mxu0 %v2604_v6  ;;  %v2697_v5 = vld [vmem:[#allocation5 + $0x78c] ss:$16 sps:$4 sm:$0xff]   ;;  %v2692_v6 = vld [vmem:[#allocation5 + $0x588] ss:$16 sps:$4 sm:$0xff]  }
  0xd8   :  { %1899 = vmatprep.subr.bf16.mxu1 %v2607_v7  ;;  %v2695_v7 = vld [vmem:[#allocation5 + $0x788] ss:$16 sps:$4 sm:$0xff]  }
  0xda   :  { %1857 = vmatpush2.bf16.msra.mxu0 %v2602_v10  ;;  %v2700_v10 = vld [vmem:[#allocation5 + $0x56c] ss:$16 sps:$4 sm:$0xff]  }
  0xdb   :  { %1900 = vmatpush2.bf16.msra.mxu1 %v2605_v11  ;;  %1858 = vmatprep.subr.bf16.mxu0 %v2610_v12  ;;  %v2703_v11 = vld [vmem:[#allocation5 + $0x76c] ss:$16 sps:$4 sm:$0xff]   ;;  %v2698_v12 = vld [vmem:[#allocation5 + $0x568] ss:$16 sps:$4 sm:$0xff]  }
  0xdc   :  { %1901 = vmatprep.subr.bf16.mxu1 %v2613_v13  ;;  %v2701_v13 = vld [vmem:[#allocation5 + $0x768] ss:$16 sps:$4 sm:$0xff]  }
  0xde   :  { %1859 = vmatpush2.bf16.msra.mxu0 %v2608_v14  ;;  %v2706_v14 = vld [vmem:[#allocation5 + $0x54c] ss:$16 sps:$4 sm:$0xff]  }
  0xdf   :  { %1902 = vmatpush2.bf16.msra.mxu1 %v2611_v15  ;;  %1860 = vmatprep.subr.bf16.mxu0 %v2616_v16  ;;  %v2709_v15 = vld [vmem:[#allocation5 + $0x74c] ss:$16 sps:$4 sm:$0xff]   ;;  %v2704_v16 = vld [vmem:[#allocation5 + $0x548] ss:$16 sps:$4 sm:$0xff]  }
  0xe0   :  { %1903 = vmatprep.subr.bf16.mxu1 %v2619_v17  ;;  %v2707_v17 = vld [vmem:[#allocation5 + $0x748] ss:$16 sps:$4 sm:$0xff]  }
  0xe2   :  { %1861 = vmatpush2.bf16.msra.mxu0 %v2614_v18  ;;  %v2712_v18 = vld [vmem:[#allocation5 + $0x52c] ss:$16 sps:$4 sm:$0xff]  }
  0xe3   :  { %1904 = vmatpush2.bf16.msra.mxu1 %v2617_v19  ;;  %1862 = vmatprep.subr.bf16.mxu0 %v2622_v22  ;;  %v2715_v19 = vld [vmem:[#allocation5 + $0x72c] ss:$16 sps:$4 sm:$0xff]   ;;  %v2710_v22 = vld [vmem:[#allocation5 + $0x528] ss:$16 sps:$4 sm:$0xff]  }
  0xe4   :  { %1905 = vmatprep.subr.bf16.mxu1 %v2625_v23  ;;  %v2713_v23 = vld [vmem:[#allocation5 + $0x728] ss:$16 sps:$4 sm:$0xff]  }
  0xe6   :  { %1863 = vmatpush2.bf16.msra.mxu0 %v2620_v24  ;;  %v2718_v24 = vld [vmem:[#allocation5 + $0x50c] ss:$16 sps:$4 sm:$0xff]  }
  0xe7   :  { %1906 = vmatpush2.bf16.msra.mxu1 %v2623_v25  ;;  %1918 = vmatprep.subr.bf16.mxu0 %v2628_v26  ;;  %v2721_v25 = vld [vmem:[#allocation5 + $0x70c] ss:$16 sps:$4 sm:$0xff]   ;;  %v2716_v26 = vld [vmem:[#allocation5 + $0x508] ss:$16 sps:$4 sm:$0xff]  }
  0xe8   :  { %1961 = vmatprep.subr.bf16.mxu1 %v2631_v27  ;;  %v2719_v27 = vld [vmem:[#allocation5 + $0x708] ss:$16 sps:$4 sm:$0xff]  }
  0xe9   :  { %1865 = vmatmul.mubr.bf16.vlgmr.msra.gmra.mxu0 %v2854_v8  ;;  %v2646_v8 = vld [vmem:[#allocation5 + $0x48c] ss:$16 sps:$4 sm:$0xff]  }
  0xea   :  { %1908 = vmatmul.mubr.bf16.vlgmr.msra.gmra.mxu1 %v2856_v9  ;;  %1919 = vmatpush1.bf16.msra.mxu0 %v2626_v28  ;;  %v2649_v9 = vld [vmem:[#allocation5 + $0x68c] ss:$16 sps:$4 sm:$0xff]   ;;  %v320_v28 = vlaneseq }
  0xeb   :  { %1962 = vmatpush1.bf16.msra.mxu1 %v2629_v29  ;;  %1920 = vmatprep.subr.bf16.mxu0 %v2634_v30 }
  0xec   :  { %1963 = vmatprep.subr.bf16.mxu1 %v2637_v31  ;;  %1950 = vmatprep.mubr.bf16.mxu0 %v2870_v41  ;;  %v2650_v41 = vld [vmem:[#allocation5 + $0x468] ss:$16 sps:$4 sm:$0xff]   ;;  %v321_v29 = vshrl.u32 %v320_v28, 7 }
  0xed   :  { %1993 = vmatprep.mubr.bf16.mxu1 %v2874_v43  ;;  %v2653_v43 = vld [vmem:[#allocation5 + $0x668] ss:$16 sps:$4 sm:$0xff]  }
  0xee   :  { %1921 = vmatpush1.bf16.msra.mxu0 %v2632_v32  ;;  %v322_v32 = vsub.s32 0, %v321_v29 }
  0xef   :  { %1964 = vmatpush1.bf16.msra.mxu1 %v2635_v33  ;;  %1922 = vmatprep.subr.bf16.mxu0 %v2640_v34  ;;  %v318_v33 = vld [vmem:[#allocation7] sm:$0xf]  ;;  %v326_v34 = vsub.s32 1, %v321_v29 }
  0xf0   :  { %1965 = vmatprep.subr.bf16.mxu1 %v2643_v35 }
  0xf2   :  { %1923 = vmatpush1.bf16.msra.mxu0 %v2638_v36 }
  0xf3   :  { %1966 = vmatpush1.bf16.msra.mxu1 %v2641_v37  ;;  %1924 = vmatprep.subr.bf16.mxu0 %v2646_v8  ;;  %v323_v37 = vrot.slane %v318_v33, %v322_v32  ;;  %v327_v8 = vrot.slane %v318_v33, %v326_v34 }
  0xf4   :  { %1967 = vmatprep.subr.bf16.mxu1 %v2649_v9 }
  0xf6   :  { %1925 = vmatpush1.bf16.msra.mxu0 %v2644_v38 }
  0xf7   :  { %1968 = vmatpush1.bf16.msra.mxu1 %v2647_v53  ;;  %1926 = vmatprep.subr.bf16.mxu0 %v2652_v55 }
  0xf8   :  { %1969 = vmatprep.subr.bf16.mxu1 %v2655_v39 }
  0xfa   :  { %1927 = vmatpush1.bf16.msra.mxu0 %v2650_v41 }
  0xfb   :  { %1970 = vmatpush1.bf16.msra.mxu1 %v2653_v43  ;;  %1928 = vmatprep.subr.bf16.mxu0 %v2658_v40 }
  0xfc   :  { %1971 = vmatprep.subr.bf16.mxu1 %v2661_v42 }
  0xfe   :  { %1929 = vmatpush1.bf16.msra.mxu0 %v2656_v44 }
  0xff   :  { %1972 = vmatpush1.bf16.msra.mxu1 %v2659_v45  ;;  %1930 = vmatprep.subr.bf16.mxu0 %v2664_v46 }
 0x100   :  { %1973 = vmatprep.subr.bf16.mxu1 %v2667_v47 }
 0x102   :  { %1931 = vmatpush1.bf16.msra.mxu0 %v2662_v48 }
 0x103   :  { %1974 = vmatpush1.bf16.msra.mxu1 %v2665_v49  ;;  %1932 = vmatprep.subr.bf16.mxu0 %v2670_v50 }
 0x104   :  { %1975 = vmatprep.subr.bf16.mxu1 %v2673_v51 }
 0x106   :  { %1933 = vmatpush1.bf16.msra.mxu0 %v2668_v52 }
 0x107   :  { %1976 = vmatpush1.bf16.msra.mxu1 %v2671_v54  ;;  %1934 = vmatprep.subr.bf16.mxu0 %v2676_v56 }
 0x108   :  { %1977 = vmatprep.subr.bf16.mxu1 %v2679_v57 }
 0x10a   :  { %1935 = vmatpush2.bf16.msra.mxu0 %v2674_v58 }
 0x10b   :  { %1978 = vmatpush2.bf16.msra.mxu1 %v2677_v59  ;;  %1936 = vmatprep.subr.bf16.mxu0 %v2682_v60 }
 0x10c   :  { %1979 = vmatprep.subr.bf16.mxu1 %v2685_v61 }
 0x10e   :  { %1937 = vmatpush2.bf16.msra.mxu0 %v2680_v62 }
 0x10f   :  { %1980 = vmatpush2.bf16.msra.mxu1 %v2683_v63  ;;  %1938 = vmatprep.subr.bf16.mxu0 %v2688_v0 }
 0x110   :  { %1981 = vmatprep.subr.bf16.mxu1 %v2691_v1 }
 0x112   :  { %1939 = vmatpush2.bf16.msra.mxu0 %v2686_v2 }
 0x113   :  { %1982 = vmatpush2.bf16.msra.mxu1 %v2689_v3  ;;  %1940 = vmatprep.subr.bf16.mxu0 %v2694_v4 }
 0x114   :  { %1983 = vmatprep.subr.bf16.mxu1 %v2697_v5 }
 0x116   :  { %1941 = vmatpush2.bf16.msra.mxu0 %v2692_v6 }
 0x117   :  { %1984 = vmatpush2.bf16.msra.mxu1 %v2695_v7  ;;  %1942 = vmatprep.subr.bf16.mxu0 %v2700_v10  ;;  %v330_v7 = vsub.s32 2, %v321_v29  ;;  %v334_v10 = vsub.s32 3, %v321_v29 }
 0x118   :  { %1985 = vmatprep.subr.bf16.mxu1 %v2703_v11 }
 0x11a   :  { %1943 = vmatpush2.bf16.msra.mxu0 %v2698_v12 }
 0x11b   :  { %1986 = vmatpush2.bf16.msra.mxu1 %v2701_v13  ;;  %1944 = vmatprep.subr.bf16.mxu0 %v2706_v14  ;;  %v331_v13 = vrot.slane %v318_v33, %v330_v7  ;;  %v335_v14 = vrot.slane %v318_v33, %v334_v10 }
 0x11c   :  { %1987 = vmatprep.subr.bf16.mxu1 %v2709_v15 }
 0x11e   :  { %1945 = vmatpush2.bf16.msra.mxu0 %v2704_v16 }
 0x11f   :  { %1988 = vmatpush2.bf16.msra.mxu1 %v2707_v17  ;;  %1946 = vmatprep.subr.bf16.mxu0 %v2712_v18 }
 0x120   :  { %1989 = vmatprep.subr.bf16.mxu1 %v2715_v19 }
 0x122   :  { %1947 = vmatpush2.bf16.msra.mxu0 %v2710_v22 }
 0x123   :  { %1990 = vmatpush2.bf16.msra.mxu1 %v2713_v23  ;;  %1948 = vmatprep.subr.bf16.mxu0 %v2718_v24 }
 0x124   :  { %1991 = vmatprep.subr.bf16.mxu1 %v2721_v25 }
 0x126   :  { %1949 = vmatpush2.bf16.msra.mxu0 %v2716_v26 }
 0x127   :  { %1992 = vmatpush2.bf16.msra.mxu1 %v2719_v27 }
 0x129   :  { %1951 = vmatmul.mubr.bf16.vlgmr.msra.gmra.mxu0 %v2880_v20  ;;  %v1694_v30 = vpop.f32.mrf.mxu0 }
 0x12a   :  { %1994 = vmatmul.mubr.bf16.vlgmr.msra.gmra.mxu1 %v2884_v21  ;;  %v1737_v31 = vpop.f32.mrf.mxu1  ;;  %v1695_v53 = vadd.f32 %v1694_v30, %v323_v37 }
 0x12b   :  { %v1696_v35 = vpop.f32.mrf.mxu0 }
 0x12c   :  { %v1739_v36 = vpop.f32.mrf.mxu1  ;;  %v1697_v55 = vadd.f32 %v1696_v35, %v327_v8  ;;  %v1738_v20 = vadd.f32 %v1737_v31, %v1695_v53 }
 0x12d   :  { %v1698_v9 = vpop.f32.mrf.mxu0 }
 0x12e   :  { %v1741_v38 = vpop.f32.mrf.mxu1  ;;  %v1699_v43 = vadd.f32 %v1698_v9, %v323_v37  ;;  %v1740_v42 = vadd.f32 %v1739_v36, %v1697_v55 }
 0x12f   :  { %v1700_v39 = vpop.f32.mrf.mxu0 }
 0x130   :  { %v1743_v41 = vpop.f32.mrf.mxu1  ;;  %v1701_v44 = vadd.f32 %v1700_v39, %v327_v8  ;;  %v1742_v48 = vadd.f32 %v1741_v38, %v1699_v43 }
 0x132   :  { %v1744_v54 = vadd.f32 %v1743_v41, %v1701_v44 }
 0x169   :  { %v1780_v21 = vpop.f32.mrf.mxu0 }
 0x16a   :  { %v1823_v40 = vpop.f32.mrf.mxu1  ;;  %v1781_v45 = vadd.f32 %v1780_v21, %v1738_v20 }
 0x16b   :  { %v1782_v46 = vpop.f32.mrf.mxu0 }
 0x16c   :  { %v1825_v47 = vpop.f32.mrf.mxu1  ;;  %v1824_v49 = vadd.f32 %v1823_v40, %v1781_v45  ;;  %v1783_v50 = vadd.f32 %v1782_v46, %v1740_v42 }
 0x16d   :  { %v1784_v51 = vpop.f32.mrf.mxu0 }
 0x16e   :  { %v1827_v52 = vpop.f32.mrf.mxu1  ;;  %v1826_v56 = vadd.f32 %v1825_v47, %v1783_v50  ;;  %v1785_v57 = vadd.f32 %v1784_v51, %v1742_v48  ;;  %v2004_v59 = vmax.f32 %v1824_v49, 0.0 }
 0x16f   :  { %v1786_v58 = vpop.f32.mrf.mxu0 }
 0x170   :  { %v2005_v60 = vmax.f32 %v1826_v56, 0.0  ;;  %v1828_v61 = vadd.f32 %v1827_v52, %v1785_v57  ;;  %v1787_v62 = vadd.f32 %v1786_v58, %v1744_v54  ;;  %v1829_v63 = vpop.f32.mrf.mxu1 }
 0x172   :  { %v2326_v0 = vpack.c.bf16 %v2005_v60, %v2004_v59  ;;  %v1830_v1 = vadd.f32 %v1829_v63, %v1787_v62  ;;  %v2008_v2 = vmax.f32 %v1828_v61, 0.0 }
 0x174   :  { %2036 = vst [vmem:[#allocation8] sm:$0xff] %v2326_v0  ;;  %v2009_v3 = vmax.f32 %v1830_v1, 0.0 }
 0x176   :  { %v2328_v4 = vpack.c.bf16 %v2009_v3, %v2008_v2 }
 0x178   :  { %2038 = vst [vmem:[#allocation8 + $0x10] sm:$0xff] %v2328_v4 }
 0x1a9   :  { %v1866_v5 = vpop.f32.mrf.mxu0 }
 0x1aa   :  { %v1909_v6 = vpop.f32.mrf.mxu1  ;;  %v1867_v17 = vadd.f32 %v1866_v5, %v331_v13 }
 0x1ab   :  { %v1868_v11 = vpop.f32.mrf.mxu0 }
 0x1ac   :  { %v1911_v12 = vpop.f32.mrf.mxu1  ;;  %v1869_v18 = vadd.f32 %v1868_v11, %v335_v14  ;;  %v1910_v23 = vadd.f32 %v1909_v6, %v1867_v17 }
 0x1ad   :  { %v1870_v15 = vpop.f32.mrf.mxu0 }
 0x1ae   :  { %v1913_v16 = vpop.f32.mrf.mxu1  ;;  %v1871_v24 = vadd.f32 %v1870_v15, %v331_v13  ;;  %v1912_v27 = vadd.f32 %v1911_v12, %v1869_v18 }
 0x1af   :  { %v1872_v19 = vpop.f32.mrf.mxu0 }
 0x1b0   :  { %v1915_v22 = vpop.f32.mrf.mxu1  ;;  %v1873_v28 = vadd.f32 %v1872_v19, %v335_v14  ;;  %v1914_v29 = vadd.f32 %v1913_v16, %v1871_v24 }
 0x1b2   :  { %v1916_v37 = vadd.f32 %v1915_v22, %v1873_v28 }
 0x1e9   :  { %v1952_v25 = vpop.f32.mrf.mxu0 }
 0x1ea   :  { %v1995_v26 = vpop.f32.mrf.mxu1  ;;  %v1953_v30 = vadd.f32 %v1952_v25, %v1910_v23 }
 0x1eb   :  { %v1954_v31 = vpop.f32.mrf.mxu0 }
 0x1ec   :  { %v1997_v32 = vpop.f32.mrf.mxu1  ;;  %v1996_v34 = vadd.f32 %v1995_v26, %v1953_v30  ;;  %v1955_v35 = vadd.f32 %v1954_v31, %v1912_v27 }
 0x1ed   :  { %v1956_v36 = vpop.f32.mrf.mxu0 }
 0x1ee   :  { %v1999_v33 = vpop.f32.mrf.mxu1  ;;  %v1998_v8 = vadd.f32 %v1997_v32, %v1955_v35  ;;  %v1957_v9 = vadd.f32 %v1956_v36, %v1914_v29  ;;  %v2006_v53 = vmax.f32 %v1996_v34, 0.0 }
 0x1ef   :  { %v1958_v38 = vpop.f32.mrf.mxu0 }
 0x1f0   :  { %v2007_v55 = vmax.f32 %v1998_v8, 0.0  ;;  %v2000_v39 = vadd.f32 %v1999_v33, %v1957_v9  ;;  %v1959_v41 = vadd.f32 %v1958_v38, %v1916_v37  ;;  %v2001_v20 = vpop.f32.mrf.mxu1 }
 0x1f2   :  { %v2327_v43 = vpack.c.bf16 %v2007_v55, %v2006_v53  ;;  %v2002_v21 = vadd.f32 %v2001_v20, %v1959_v41  ;;  %v2010_v40 = vmax.f32 %v2000_v39, 0.0 }
 0x1f4   :  { %2037 = vst [vmem:[#allocation8 + $0x8] sm:$0xff] %v2327_v43  ;;  %v2011_v42 = vmax.f32 %v2002_v21, 0.0 }
 0x1f6   :  { %v2329_v44 = vpack.c.bf16 %v2011_v42, %v2010_v40 }
 0x1f8   :  { %2039 = vst [vmem:[#allocation8 + $0x18] sm:$0xff] %v2329_v44 }
 0x1f9   :  { %2793 = shalt.err (!%p2790_p5)
}
 0x1fa   :  { %2051 = dma.vmem_to_hbm [thread:$0]  %s2046_s2, 512, %s2905_s3, [#allocation4], %s2809_s15, %s2809_s15, %s2810_s16  }
 0x1fb   :  { %2806 = dma.done.wait [#allocation4], 512  }
 0x1fc   :  { %2807 = vsyncadd [#allocation4], 4294966784 }
 0x1fd   :  { %2055 = vsyncpa [#allocation3], 1 }
 0x1fe   :  { %2056 = vsyncpa [#allocation6], 1 }
 0x1ff   :  { %2057 = vsyncpa [#allocation4], 1 }

</bundles_post_ra>
